<compile_context>
chip_gen: v7x
topology: tpu7x:2x2x1
jax: 0.10.0
libtpu: 0.0.40
codegen_flags: <defaults>
</compile_context>

<pallas_src>
import jax
import jax.numpy as jnp
from jax import lax
from jax.experimental import pallas as pl
from jax.experimental.pallas import tpu as pltpu

BN_EPS = 1e-5              # PyTorch BatchNorm1d default eps
SOFTPLUS_THRESHOLD = 20.0  # PyTorch Softplus default threshold


def _round_up(x, m):
    return (x + m - 1) // m * m


def _softplus(x):
    # matches torch.nn.Softplus(beta=1, threshold=20)
    safe = jnp.minimum(x, SOFTPLUS_THRESHOLD)
    return jnp.where(x > SOFTPLUS_THRESHOLD, x, jnp.log1p(jnp.exp(safe)))


def _vmem_capacity_bytes():
    try:
        info = pltpu.get_tpu_info()
        cap = getattr(info, "vmem_capacity_bytes", None)
        if cap:
            return int(cap)
    except Exception:
        pass
    return 64 << 20  # conservative: v7x per-TC VMEM


def _vmem_limit_bytes(footprint_bytes):
    cap = _vmem_capacity_bytes()
    limit = max(2 * int(footprint_bytes) + (4 << 20), 16 << 20)
    return int(min(limit, cap * 3 // 4))


# --------------------------------------------------------------------------
# Kernel A: K-streamed (and optionally N-parallel) first-layer matmul.
# grid = (n_n, nk); axis 0 "parallel" (v7x dual-TC), axis 1 "arbitrary" (K).
# --------------------------------------------------------------------------
def _first_layer_kernel(bow_ref, w_ref, b_ref, h_ref, acc_ref):
    k = pl.program_id(1)

    @pl.when(k == 0)
    def _():
        acc_ref[...] = jnp.zeros_like(acc_ref)

    # f32 LHS x (pre-cast, possibly bf16) streamed RHS; f32 accumulation.
    acc_ref[...] += jnp.dot(
        bow_ref[...],
        w_ref[...].astype(jnp.float32),
        preferred_element_type=jnp.float32,
    )

    @pl.when(k == pl.num_programs(1) - 1)
    def _():
        h_ref[...] = _softplus(acc_ref[...] + b_ref[...])


# --------------------------------------------------------------------------
# Kernel B: tiny epilogue (hidden stack + dropout + fused heads + BN + exp).
# Single grid step; all operands small and fully resident in VMEM.
# --------------------------------------------------------------------------
def _make_epilogue_kernel(num_hidden_layers, use_dropout):
    def kernel(*refs):
        it = iter(refs)
        h_ref = next(it)
        hidden = [(next(it), next(it)) for _ in range(num_hidden_layers)]
        drop_ref = next(it) if use_dropout else None
        w_head_ref, b_head_ref, mask_ref = next(it), next(it), next(it)
        out_ref = next(it)

        h = h_ref[...]
        # All temporaries here are (batch, <=hidden) sized; live ranges are
        # bounded by this single-step kernel (not by the streaming grid).
        for w_ref, b_ref in hidden:
            h = _softplus(
                jnp.dot(h, w_ref[...], preferred_element_type=jnp.float32)
                + b_ref[...]
            )

        if use_dropout:
            h = h * drop_ref[...]   # inverted-dropout mask (already scaled)

        # Fused head projection: one MXU pass for all four heads.
        y = jnp.dot(h, w_head_ref[...], preferred_element_type=jnp.float32) \
            + b_head_ref[...]

        # BatchNorm1d(affine=False), training mode: batch mean, biased
        # variance, two-pass (centered) statistics for numerical robustness.
        mean = jnp.mean(y, axis=0, keepdims=True)
        centered = y - mean
        var = jnp.mean(centered * centered, axis=0, keepdims=True)
        bn = centered * lax.rsqrt(var + BN_EPS)

        # exp() only where the precomputed log-sigma mask says so.
        out_ref[...] = jnp.where(mask_ref[...] > 0.5, jnp.exp(bn), bn)

    return kernel


def init_params(key, input_size, hidden_sizes, z_private, z_shared):
    """PyTorch nn.Linear default init.

    The module's weight_init() iterates over module-name *strings*, so every
    branch no-ops and each Linear keeps its default init:
    kaiming_uniform_(a=sqrt(5)) => bound 1/sqrt(fan_in) for weight and bias.
    Weights are stored (in, out) — i.e. transposed vs torch's (out, in).
    """
    def linear(k, fan_in, fan_out):
        kw, kb = jax.random.split(k)
        bound = float(fan_in) ** -0.5
        w = jax.random.uniform(kw, (fan_in, fan_out), jnp.float32, -bound, bound)
        b = jax.random.uniform(kb, (1, fan_out), jnp.float32, -bound, bound)
        return w, b

    dims_in = (input_size,) + tuple(hidden_sizes[:-1])
    dims_out = tuple(hidden_sizes)

    keys = jax.random.split(key, len(dims_in) + 4)
    params = []
    for k, (di, do) in zip(keys[: len(dims_in)], zip(dims_in, dims_out)):
        params.extend(linear(k, di, do))
    h_last = hidden_sizes[-1]
    params.extend(linear(keys[-4], h_last, z_private))   # fc_mu_private
    params.extend(linear(keys[-3], h_last, z_private))   # fc_log_sigma_private
    params.extend(linear(keys[-2], h_last, z_shared))    # fc_mu_shared
    params.extend(linear(keys[-1], h_last, z_shared))    # fc_log_sigma_shared
    return params


def encoder_forward(bow, params, hidden_sizes, z_private, z_shared, *,
                    mxu_dtype=None, tile_k=1024, n_split=1, dropout_mask=None):
    """Forward pass.

    mxu_dtype    : None (f32 streamed weight) or jnp.bfloat16 — the streamed
                   W_in is pre-cast in the wrapper (halves the dominant HBM
                   stream); the LHS and all accumulation stay f32.
    tile_k       : requested K tile (multiple of 256 recommended); auto-shrunk
                   so the double-buffered streaming footprint fits in VMEM.
    n_split      : split hidden0 over a "parallel" grid axis (set 2 on v7x to
                   use both TensorCores); requires hidden0 % (128*n_split)==0.
    dropout_mask : optional (batch, hidden_sizes[-1]) inverted-dropout mask
                   (0 or 1/(1-p)), generated with jax.random in the caller and
                   applied inside the epilogue kernel.
    """
    batch, input_size = bow.shape
    num_hidden_layers = len(hidden_sizes) - 1
    hidden0 = hidden_sizes[0]
    h_last = hidden_sizes[-1]

    # ---- unpack params (PyTorch-like separate layout) ----
    it = iter(params)
    w_in, b_in = next(it), next(it)
    hidden_params = [(next(it), next(it)) for _ in range(num_hidden_layers)]
    w_mp, b_mp = next(it), next(it)
    w_lp, b_lp = next(it), next(it)
    w_ms, b_ms = next(it), next(it)
    w_ls, b_ls = next(it), next(it)

    # ---- N (hidden0) tiling: >1 only when requested and cleanly divisible ----
    if n_split > 1 and hidden0 % (128 * n_split) == 0:
        tile_n = hidden0 // n_split
    else:
        tile_n = hidden0
    n_n = hidden0 // tile_n

    # ---- streamed-weight dtype (pre-cast in the wrapper, not in-kernel) ----
    w_stream_dtype = jnp.float32 if mxu_dtype is None else mxu_dtype
    w_bytes = jnp.dtype(w_stream_dtype).itemsize

    # ---- K tile selection under the per-chip VMEM budget (v7x: 64 MiB) ----
    k_full = _round_up(input_size, 128)
    budget = _vmem_capacity_bytes() * 3 // 4
    tk = min(_round_up(tile_k, 128), k_full)

    def stream_footprint(tk_):
        return (2 * batch * tk_ * 4            # bow blocks (f32, double-buffered)
                + 2 * tk_ * tile_n * w_bytes   # W_in blocks (double-buffered)
                + 2 * 1 * tile_n * 4           # bias block
                + 2 * batch * tile_n * 4       # output block
                + batch * tile_n * 4)          # accumulator scratch

    while tk > 128 and stream_footprint(tk) > budget:
        tk -= 128
    tile_k_eff = tk

    k_pad = _round_up(input_size, tile_k_eff)
    nk = k_pad // tile_k_eff

    if k_pad != input_size:
        bow_p = jnp.pad(bow, ((0, 0), (0, k_pad - input_size)))
        w_in_p = jnp.pad(w_in, ((0, k_pad - input_size), (0, 0)))
    else:
        bow_p, w_in_p = bow, w_in
    w_in_p = w_in_p.astype(w_stream_dtype)   # bf16 here saves HBM bytes; bow stays f32

    flops_a = 2 * batch * k_pad * hidden0
    bytes_a = (4 * batch * k_pad * n_n + w_bytes * k_pad * hidden0
               + 4 * hidden0 + 4 * batch * hidden0)
    cost_a = pl.CostEstimate(flops=int(flops_a),
                             transcendentals=int(batch * hidden0),
                             bytes_accessed=int(bytes_a))

    h = pl.pallas_call(
        _first_layer_kernel,
        out_shape=jax.ShapeDtypeStruct((batch, hidden0), jnp.float32),
        grid_spec=pltpu.PrefetchScalarGridSpec(
            num_scalar_prefetch=0,
            grid=(n_n, nk),
            in_specs=[
                pl.BlockSpec((batch, tile_k_eff), lambda j, k: (0, k)),   # bow
                pl.BlockSpec((tile_k_eff, tile_n), lambda j, k: (k, j)),  # W_in
                pl.BlockSpec((1, tile_n), lambda j, k: (0, j)),           # b_in
            ],
            out_specs=pl.BlockSpec((batch, tile_n), lambda j, k: (0, j)),
            scratch_shapes=[pltpu.VMEM((batch, tile_n), jnp.float32)],
        ),
        compiler_params=pltpu.CompilerParams(
            dimension_semantics=("parallel", "arbitrary"),
            vmem_limit_bytes=_vmem_limit_bytes(stream_footprint(tile_k_eff)),
        ),
        cost_estimate=cost_a,
    )(bow_p, w_in_p, b_in)

    # ---- fuse the four heads into one lane-dense slab ----
    zp, zs = z_private, z_shared
    head_total = 2 * zp + 2 * zs
    out_pad = _round_up(head_total, 128)
    w_head = jnp.concatenate([w_mp, w_lp, w_ms, w_ls], axis=1)
    b_head = jnp.concatenate([b_mp, b_lp, b_ms, b_ls], axis=1)
    if out_pad > head_total:
        w_head = jnp.pad(w_head, ((0, 0), (0, out_pad - head_total)))
        b_head = jnp.pad(b_head, ((0, 0), (0, out_pad - head_total)))

    # Hoisted log-sigma column mask (passed in, no in-kernel iota).
    col = jnp.arange(out_pad)
    log_sigma_mask = (((col >= zp) & (col < 2 * zp))
                      | ((col >= 2 * zp + zs) & (col < 2 * zp + 2 * zs)))
    log_sigma_mask = log_sigma_mask.astype(jnp.float32)[None, :]

    use_dropout = dropout_mask is not None
    epi_inputs = [h]
    for w, b in hidden_params:
        epi_inputs += [w, b]
    if use_dropout:
        epi_inputs.append(dropout_mask.astype(jnp.float32))
    epi_inputs += [w_head, b_head, log_sigma_mask]

    def full_spec(arr):
        nd = arr.ndim
        return pl.BlockSpec(arr.shape, lambda i, _nd=nd: (0,) * _nd)

    epi_footprint = 2 * 4 * (sum(int(a.size) for a in epi_inputs)
                             + batch * out_pad)
    flops_b = 2 * batch * (
        sum(hi * ho for hi, ho in zip(hidden_sizes[:-1], hidden_sizes[1:]))
        + h_last * out_pad)
    cost_b = pl.CostEstimate(
        flops=int(flops_b),
        transcendentals=int(batch * (sum(hidden_sizes[1:]) + out_pad)),
        bytes_accessed=int(epi_footprint // 2))

    out_slab = pl.pallas_call(
        _make_epilogue_kernel(num_hidden_layers, use_dropout),
        out_shape=jax.ShapeDtypeStruct((batch, out_pad), jnp.float32),
        grid_spec=pltpu.PrefetchScalarGridSpec(
            num_scalar_prefetch=0,
            grid=(1,),
            in_specs=[full_spec(a) for a in epi_inputs],
            out_specs=pl.BlockSpec((batch, out_pad), lambda i: (0, 0)),
        ),
        compiler_params=pltpu.CompilerParams(
            dimension_semantics=("arbitrary",),
            vmem_limit_bytes=_vmem_limit_bytes(epi_footprint),
        ),
        cost_estimate=cost_b,
    )(*epi_inputs)

    mu_p = out_slab[:, :zp]
    std_p = out_slab[:, zp:2 * zp]
    mu_s = out_slab[:, 2 * zp:2 * zp + zs]
    std_s = out_slab[:, 2 * zp + zs:2 * zp + 2 * zs]
    return mu_p, std_p, mu_s, std_s


# --------------------------------------------------------------------------
# Pure-JAX reference for correctness checks.
# --------------------------------------------------------------------------
def ref_forward(x, params, hidden_sizes, zp, zs, *, dropout_mask=None,
                w_in_cast=None):
    def mm(a, b):
        return jnp.dot(a, b, precision=jax.lax.Precision.HIGHEST)

    it = iter(params)
    w_in, b_in = next(it), next(it)
    if w_in_cast is not None:
        w_in = w_in.astype(w_in_cast).astype(jnp.float32)
    h = jax.nn.softplus(mm(x, w_in) + b_in)
    for _ in range(len(hidden_sizes) - 1):
        w, b = next(it), next(it)
        h = jax.nn.softplus(mm(h, w) + b)
    if dropout_mask is not None:
        h = h * dropout_mask
    outs = []
    for _ in range(4):
        w, b = next(it), next(it)
        y = mm(h, w) + b
        m = y.mean(0, keepdims=True)
        v = ((y - m) ** 2).mean(0, keepdims=True)
        outs.append((y - m) / jnp.sqrt(v + BN_EPS))
    return outs[0], jnp.exp(outs[1]), outs[2], jnp.exp(outs[3])


if __name__ == "__main__":
    BATCH = 8
    INPUT_SIZE = 200           # not a multiple of 128 -> exercises K padding
    HIDDEN_SIZES = (256, 32)   # hidden0=256 -> supports n_split=2 (v7x path)
    Z_PRIVATE = 40
    Z_SHARED = 10
    TILE_K = 128               # small tile so the demo exercises a 2-step K grid

    key = jax.random.PRNGKey(0)
    k_params, k_x, k_drop = jax.random.split(key, 3)

    params = init_params(k_params, INPUT_SIZE, HIDDEN_SIZES, Z_PRIVATE, Z_SHARED)
    bow = jax.random.uniform(k_x, (BATCH, INPUT_SIZE), jnp.float32)

    TOL = dict(atol=2e-3, rtol=2e-3)

    # (1) f32 path, single-TC grid layout.
    outs = encoder_forward(bow, params, HIDDEN_SIZES, Z_PRIVATE, Z_SHARED,
                           mxu_dtype=None, tile_k=TILE_K, n_split=1)
    jax.block_until_ready(outs)
    refs = ref_forward(bow, params, HIDDEN_SIZES, Z_PRIVATE, Z_SHARED)
    for a, b in zip(outs, refs):
        assert a.shape == b.shape
        assert jnp.allclose(a, b, **TOL)

    # (2) f32 path with hidden0 split over the "parallel" axis (v7x dual-TC).
    outs2 = encoder_forward(bow, params, HIDDEN_SIZES, Z_PRIVATE, Z_SHARED,
                            mxu_dtype=None, tile_k=TILE_K, n_split=2)
    jax.block_until_ready(outs2)
    for a, b in zip(outs2, refs):
        assert jnp.allclose(a, b, **TOL)

    # (3) bf16 pre-cast streamed weight (HBM-bandwidth mode), checked against
    #     a reference that quantizes W_in identically.
    outs3 = encoder_forward(bow, params, HIDDEN_SIZES, Z_PRIVATE, Z_SHARED,
                            mxu_dtype=jnp.bfloat16, tile_k=TILE_K, n_split=2)
    jax.block_until_ready(outs3)
    refs3 = ref_forward(bow, params, HIDDEN_SIZES, Z_PRIVATE, Z_SHARED,
                        w_in_cast=jnp.bfloat16)
    for a, b in zip(outs3, refs3):
        assert jnp.allclose(a, b, **TOL)
        assert bool(jnp.all(jnp.isfinite(a)))

    # (4) train-mode dropout: inverted-dropout mask generated with jax.random
    #     in the wrapper and applied inside the epilogue kernel.
    p_drop = 0.2
    keep = jax.random.bernoulli(k_drop, 1.0 - p_drop, (BATCH, HIDDEN_SIZES[-1]))
    drop_mask = keep.astype(jnp.float32) / (1.0 - p_drop)
    outs4 = encoder_forward(bow, params, HIDDEN_SIZES, Z_PRIVATE, Z_SHARED,
                            tile_k=TILE_K, dropout_mask=drop_mask)
    jax.block_until_ready(outs4)
    refs4 = ref_forward(bow, params, HIDDEN_SIZES, Z_PRIVATE, Z_SHARED,
                        dropout_mask=drop_mask)
    for a, b in zip(outs4, refs4):
        assert jnp.allclose(a, b, **TOL)

    mu_p, std_p, mu_s, std_s = outs
    assert mu_p.shape == (BATCH, Z_PRIVATE) and std_p.shape == (BATCH, Z_PRIVATE)
    assert mu_s.shape == (BATCH, Z_SHARED) and std_s.shape == (BATCH, Z_SHARED)

    print("KERNEL_OK")
</pallas_src>

<mosaic_0001>
module attributes {stable_mosaic.version = 11 : i64} {
  func.func @_first_layer_kernel(%arg0: i32, %arg1: i32, %arg2: memref<8x128xf32, #tpu.memory_space<vmem>>, %arg3: memref<128x256xf32, #tpu.memory_space<vmem>>, %arg4: memref<1x256xf32, #tpu.memory_space<vmem>>, %arg5: memref<8x256xf32, #tpu.memory_space<vmem>>, %arg6: memref<8x256xf32, #tpu.memory_space<vmem>>) attributes {dimension_semantics = [#tpu.dimension_semantics<parallel>, #tpu.dimension_semantics<arbitrary>], iteration_bounds = array<i64: 1, 2>, scalar_prefetch = 0 : i64, scratch_operands = 1 : i64, tpu.core_type = #tpu.core_type<tc>, window_params = [{transform_indices = @transform_0, window_bounds = array<i64: 8, 128>}, {transform_indices = @transform_1, window_bounds = array<i64: 128, 256>}, {transform_indices = @transform_2, window_bounds = array<i64: 1, 256>}, {transform_indices = @transform_3, window_bounds = array<i64: 8, 256>}]} {
    %c0_i32 = arith.constant 0 : i32
    %0 = arith.cmpi eq, %arg1, %c0_i32 : i32
    %1 = arith.extui %0 : i1 to i32
    %c0_i32_0 = arith.constant 0 : i32
    %2 = arith.cmpi ne, %1, %c0_i32_0 : i32
    scf.if %2 {
      %cst_9 = arith.constant 0.000000e+00 : f32
      %12 = vector.broadcast %cst_9 : f32 to vector<8x256xf32>
      %c0_10 = arith.constant 0 : index
      %c0_11 = arith.constant 0 : index
      %13 = vector.load %arg6[%c0_10, %c0_11] : memref<8x256xf32, #tpu.memory_space<vmem>>, vector<8x256xf32>
      tpu.vector_store %arg6[%c0_10, %c0_11], %12 {strides = array<i32>} : memref<8x256xf32, #tpu.memory_space<vmem>>, vector<8x256xf32>,
    } else {
    }
    %c0 = arith.constant 0 : index
    %c0_1 = arith.constant 0 : index
    %3 = vector.load %arg6[%c0, %c0_1] : memref<8x256xf32, #tpu.memory_space<vmem>>, vector<8x256xf32>
    %c0_2 = arith.constant 0 : index
    %c0_3 = arith.constant 0 : index
    %4 = vector.load %arg2[%c0_2, %c0_3] : memref<8x128xf32, #tpu.memory_space<vmem>>, vector<8x128xf32>
    %c0_4 = arith.constant 0 : index
    %c0_5 = arith.constant 0 : index
    %5 = vector.load %arg3[%c0_4, %c0_5] : memref<128x256xf32, #tpu.memory_space<vmem>>, vector<128x256xf32>
    %cst = arith.constant dense<0.000000e+00> : vector<8x256xf32>
    %6 = tpu.matmul %4, %5, %cst {dimension_numbers = #tpu.dot_dimension_numbers<[1], [0], [0], [1], [0, 0, 1, 1], [], []>} : vector<8x128xf32>, vector<128x256xf32>, vector<8x256xf32> -> vector<8x256xf32>
    %7 = arith.addf %3, %6 : vector<8x256xf32>
    %c0_6 = arith.constant 0 : index
    %c0_7 = arith.constant 0 : index
    %8 = vector.load %arg6[%c0_6, %c0_7] : memref<8x256xf32, #tpu.memory_space<vmem>>, vector<8x256xf32>
    tpu.vector_store %arg6[%c0_6, %c0_7], %7 {strides = array<i32>} : memref<8x256xf32, #tpu.memory_space<vmem>>, vector<8x256xf32>,
    %c1_i32 = arith.constant 1 : i32
    %9 = arith.cmpi eq, %arg1, %c1_i32 : i32
    %10 = arith.extui %9 : i1 to i32
    %c0_i32_8 = arith.constant 0 : i32
    %11 = arith.cmpi ne, %10, %c0_i32_8 : i32
    scf.if %11 {
      %c0_9 = arith.constant 0 : index
      %c0_10 = arith.constant 0 : index
      %12 = vector.load %arg6[%c0_9, %c0_10] : memref<8x256xf32, #tpu.memory_space<vmem>>, vector<8x256xf32>
      %c0_11 = arith.constant 0 : index
      %c0_12 = arith.constant 0 : index
      %13 = vector.load %arg4[%c0_11, %c0_12] : memref<1x256xf32, #tpu.memory_space<vmem>>, vector<1x256xf32>
      %14 = vector.broadcast %13 : vector<1x256xf32> to vector<8x256xf32>
      %15 = arith.addf %12, %14 : vector<8x256xf32>
      %cst_13 = arith.constant 2.000000e+01 : f32
      %16 = vector.broadcast %cst_13 : f32 to vector<8x256xf32>
      %17 = arith.minimumf %15, %16 : vector<8x256xf32>
      %cst_14 = arith.constant 2.000000e+01 : f32
      %18 = vector.broadcast %cst_14 : f32 to vector<8x256xf32>
      %19 = arith.cmpf ogt, %15, %18 : vector<8x256xf32>
      %20 = math.exp %17 : vector<8x256xf32>
      %21 = math.log1p %20 : vector<8x256xf32>
      %22 = arith.select %19, %15, %21 : vector<8x256xi1>, vector<8x256xf32>
      %c0_15 = arith.constant 0 : index
      %c0_16 = arith.constant 0 : index
      %23 = vector.load %arg5[%c0_15, %c0_16] : memref<8x256xf32, #tpu.memory_space<vmem>>, vector<8x256xf32>
      tpu.vector_store %arg5[%c0_15, %c0_16], %22 {strides = array<i32>} : memref<8x256xf32, #tpu.memory_space<vmem>>, vector<8x256xf32>,
    } else {
    }
    return
  }
  func.func @transform_0(%arg0: i32, %arg1: i32) -> (i32, i32) {
    %c0_i32 = arith.constant 0 : i32
    %c0_i32_0 = arith.constant 0 : i32
    return %c0_i32, %arg1 : i32, i32
  }
  func.func @transform_1(%arg0: i32, %arg1: i32) -> (i32, i32) {
    %c0_i32 = arith.constant 0 : i32
    return %arg1, %arg0 : i32, i32
  }
  func.func @transform_2(%arg0: i32, %arg1: i32) -> (i32, i32) {
    %c0_i32 = arith.constant 0 : i32
    %c0_i32_0 = arith.constant 0 : i32
    return %c0_i32, %arg0 : i32, i32
  }
  func.func @transform_3(%arg0: i32, %arg1: i32) -> (i32, i32) {
    %c0_i32 = arith.constant 0 : i32
    %c0_i32_0 = arith.constant 0 : i32
    return %c0_i32, %arg0 : i32, i32
  }
}

</mosaic_0001>

<bundles_post_ra>
// kernel: tpu_custom_call.1
= control target key start
LH: loop header
LB: loop body
LE: loop exit
PB: predicated region body
PF: predicated region fallthrough
CT: control target
= control target key end

     0   :  { %8 = vsyncpa [#allocation4], 0  ;;  %s1079_s0 = inlined_call_operand.hbm [shape: f32[8,256], index: 0, kind: input, shape index: {}]   ;;  %s1080_s1 = inlined_call_operand.hbm [shape: f32[256,256], index: 1, kind: input, shape index: {}]   ;;  %s1081_s2 = inlined_call_operand.vmem [shape: f32[1,256], index: 2, kind: input, shape index: {}]   ;;  %s1082_s3 = inlined_call_operand.hbm [shape: f32[8,256], index: 3, kind: output, shape index: {}]  }
   0x1   :  { %10 = vsyncpa [#allocation4 + $0x1], 0 }
   0x2   :  { %11 = vsyncpa [#allocation7], 0 }
   0x3   :  { %13 = vsyncpa [#allocation7 + $0x1], 0 }
   0x4   :  { %14 = vsyncpa [#allocation5], 0  ;;  %s838_s12 = smov 0   ;;  %s840_s13 = smov 0  }
   0x5   :  { %s842_s14 = smov 0   ;;  %s844_s15 = smov 0  }
   0x6   :  { %s846_s16 = smov 0   ;;  %s848_s17 = smov 0  }
   0x7 LB: > { %s533_s18 = sadd.s32 4294967295, %s809_s17   ;;  %s29_s19 = sadd.s32 1, %s805_s16  ;;  %s809_s17 = sphi %s848_s17, %s20_s17   ;;  %s805_s16 = sphi %s846_s16, %s1096_s16   ;;  %s801_s15 = sphi %s844_s15, %s1095_s15   ;;  %s797_s14 = sphi %s842_s14, %s1094_s14   ;;  %s793_s13 = sphi %s840_s13, %s1093_s13   ;;  %s789_s12 = sphi %s838_s12, %s1092_s12  }
   0x8   : > { %p30_p0 = scmp.ge.s32.totalorder %s29_s19, 2  ;;  %s39_s20 = sadd.s32 1, %s797_s14 }
   0x9   : > { %p46_p1 = scmp.ne.s32.totalorder %s797_s14, %s793_s13  ;;  %p47_p2 = scmp.eq.s32.totalorder %s809_s17, 0 }
   0xa   : > { %s1098_s19 = smov (%p30_p0, %s29_s19), 0  ;;  %p52_p4 = scmp.ne.s32.totalorder %s793_s13, %s789_s12 }
   0xb   : > { %p874_p3 = por %p47_p2, %p46_p1  ;;  %s36_s22 = ssub.s32 %s805_s16, %s1098_s19 }
   0xc   : > { %p53_p5 = scmp.eq.s32.totalorder %s533_s18, 0  ;;  %p37_p6 = scmp.eq.s32.totalorder %s36_s22, 0 }
   0xd   : > { %p601_p8 = scmp.lt.s32.totalorder %s809_s17, 2  ;;  %s892_s25 = sand.u32 1, %s797_s14  }
   0xe   : > { %p883_p7 = por %p53_p5, %p52_p4  ;;  %s538_s26 = sshll.u32 %s805_s16, 7 }
   0xf   : > { %s889_s24 = scalar_select %p37_p6, %s797_s14, %s39_s20  }
  0x10   : > { %s1085_s23 = scalar_select %p883_p7, 1, 0 }
  0x11   : > { %s537_s27 = sshll.u32 %s892_s25, 3  ;;  %s899_s30 = scalar_lea.hbm %s1079_s0, %s538_s26 }
  0x12   : > { %s168_s4 = scalar_lea.vmem [#allocation3], %s537_s27  ;;  %p903_p9 = pnand %p601_p8, %p874_p3 }
  0x13   : > { %s175_s5 = sshll.u32 %s168_s4, 4  ;;  %s165_s7 = scalar_lea.sflag [#allocation4], %s892_s25  ;;  %s907_s5 = int_to_ptr.vmem [resolvable:$true] %s175_s5 }
  0x14   : > { %s665_s8 = scalar_lea.hbm %s899_s30, 128  ;;  %p667_p13 = pneg %p903_p9 }
  0x15   : > { %p666_p12 = scmp.ne.s32.totalorder %s899_s30, %s665_s8  ;;  %s670_s11 = scalar_lea.hbm %s1079_s0, 256 }
  0x16   : > { %p671_p2 = scmp.lt.u32.totalorder %s899_s30, %s1079_s0  ;;  %p672_p3 = scmp.lt.u32.totalorder %s670_s11, %s665_s8 }
  0x17   : > { %p668_p0 = pnand %p667_p13, %p666_p12  ;;  %p674_p5 = scmp.lt.u32.totalorder %s665_s8, %s899_s30 }
  0x18   : > { %p673_p4 = por %p672_p3, %p671_p2 }
  0x19   : > { %p669_p1 = pneg %p668_p0 }
  0x1a   : > { %p675_p6 = por %p674_p5, %p673_p4 }
  0x1c   : > { %p676_p8 = pnand %p675_p6, %p669_p1 }
  0x1e   : > { %679 = shalt.err (!%p676_p8)
}
  0x1f   : > { %s680_s21 = scalar_lea.vmem %s907_s5, 128  ;;  %s811_s22 = smov [#allocation3]  }
  0x20   : > { %p681_p12 = scmp.ne.s32.totalorder %s907_s5, %s680_s21  ;;  %s685_s26 = sshll.u32 %s811_s22, 4  ;;  %s686_s26 = int_to_ptr.vmem [resolvable:$false] %s685_s26 }
  0x21   : > { %s687_s27 = scalar_lea.vmem %s686_s26, 256  ;;  %p688_p11 = scmp.lt.s32.totalorder %s907_s5, %s686_s26 }
  0x22   : > { %p683_p0 = pnand %p681_p12, %p667_p13  ;;  %p689_p2 = scmp.lt.s32.totalorder %s687_s27, %s680_s21 }
  0x24   : > { %p684_p10 = pneg %p683_p0  ;;  %p690_p3 = por %p689_p2, %p688_p11 }
  0x26   : > { %p691_p4 = pnand %p690_p3, %p684_p10 }
  0x28   : > { %694 = shalt.err (!%p691_p4)
}
  0x29   : > { %597 = dma.hbm_to_vmem [thread:$0]  (!%p903_p9), %s899_s30, 128, %s907_s5, %s165_s7  }
  0x2a   : > { %p1087_p1 = scmp.lt.s32.totalorder %s809_s17, 3  ;;  %p1088_p5 = scmp.ge.s32.totalorder %s809_s17, 1 }
  0x2b   : > { %s539_s29 = sshll.u32 %s892_s25, 8  ;;  %s553_s4 = sshll.u32 %s805_s16, 12 }
  0x2c   : > { %p941_p6 = pnand %p1088_p5, %p1087_p1  ;;  %s950_s10 = scalar_lea.hbm %s1080_s1, %s553_s4 }
  0x2d   : > { %s186_s11 = scalar_lea.vmem [#allocation6], %s539_s29  ;;  %s183_s30 = scalar_lea.sflag [#allocation7], %s892_s25 }
  0x2e   : > { %s196_s12 = sshll.u32 %s186_s11, 4  ;;  %s695_s5 = scalar_lea.hbm %s950_s10, 4096  ;;  %s952_s12 = int_to_ptr.vmem [resolvable:$true] %s196_s12 }
  0x2f   : > { %p696_p10 = scmp.ne.s32.totalorder %s950_s10, %s695_s5  ;;  %s700_s21 = scalar_lea.hbm %s1080_s1, 8192 }
  0x30   : > { %p701_p12 = scmp.lt.u32.totalorder %s950_s10, %s1080_s1  ;;  %p702_p0 = scmp.lt.u32.totalorder %s700_s21, %s695_s5 }
  0x31   : > { %p698_p11 = pnand %p696_p10, %p667_p13  ;;  %p704_p3 = scmp.lt.u32.totalorder %s695_s5, %s950_s10 }
  0x32   : > { %p703_p2 = por %p702_p0, %p701_p12 }
  0x33   : > { %p699_p8 = pneg %p698_p11 }
  0x34   : > { %p705_p4 = por %p704_p3, %p703_p2 }
  0x36   : > { %p706_p1 = pnand %p705_p4, %p699_p8 }
  0x38   : > { %709 = shalt.err (!%p706_p1)
}
  0x39   : > { %s710_s27 = scalar_lea.vmem %s952_s12, 4096  ;;  %s812_s29 = smov [#allocation6]  }
  0x3a   : > { %p711_p5 = scmp.ne.s32.totalorder %s952_s12, %s710_s27  ;;  %s715_s4 = sshll.u32 %s812_s29, 4  ;;  %s716_s4 = int_to_ptr.vmem [resolvable:$false] %s715_s4 }
  0x3b   : > { %s717_s8 = scalar_lea.vmem %s716_s4, 8192  ;;  %p718_p7 = scmp.lt.s32.totalorder %s952_s12, %s716_s4 }
  0x3c   : > { %p713_p10 = pnand %p711_p5, %p667_p13  ;;  %p719_p12 = scmp.lt.s32.totalorder %s717_s8, %s710_s27 }
  0x3e   : > { %p714_p11 = pneg %p713_p10  ;;  %p720_p0 = por %p719_p12, %p718_p7 }
  0x40   : > { %p721_p2 = pnand %p720_p0, %p714_p11 }
  0x42   : > { %724 = shalt.err (!%p721_p2)
}
  0x43   : > { %s813_s9 = smov 256   ;;  %s814_s11 = smov 16  }
  0x44   : > { %600 = dma.hbm_to_vmem [thread:$0]  (!%p903_p9), %s950_s10, 4096, %s952_s12, %s183_s30, %s813_s9, %s813_s9, %s814_s11  }
  0x45   : > { %208 = sbr.rel (%p941_p6) target bundleno = 407 (0x197), region = 32  ;;  %s210_s5 = sand.u32 (!%p941_p6), 1, %s793_s13  }
  0x46   : > { %s544_s7 = sshll.u32 (!%p941_p6), %s210_s5, 3  ;;  %s211_s20 = scalar_lea.sflag (!%p941_p6), [#allocation4], %s210_s5 }
  0x47   : > { %s983_s21 = scalar_lea.vmem (!%p941_p6), [#allocation3], %s544_s7  ;;  %p1090_p7 = scmp.ne.s32.totalorder (!%p941_p6), %s1085_s23, 0 }
  0x4c   : > { %776 = dma.done.wait (%p1090_p7), %s211_s20, 128  }
  0x4d   : > { %778 = vsyncadd (%p1090_p7), %s211_s20, 4294967168  ;;  %s545_s22 = sshll.u32 %s210_s5, 8  ;;  %s220_s6 = scalar_lea.sflag [#allocation7], %s210_s5 }
  0x4e   : > { %s989_s25 = scalar_lea.vmem [#allocation6], %s545_s22 }
  0x4f   : > { %780 = dma.done.wait (%p1090_p7), %s220_s6, 4096  }
  0x50   : > { %782 = vsyncadd (%p1090_p7), %s220_s6, 4294963200  ;;  %p546_p9 = scmp.ne.s32.totalorder %s801_s15, 0 }
  0x51   : > { %v815_v0 = vmov (!%p546_p9), 0.0  }
  0x52   : > { %261 = sbr.rel (%p546_p9) target bundleno = 89 (0x59), region = 44  ;;  %262 = vst [vmem:[#allocation2] sm:$0xff] (!%p546_p9), %v815_v0  ;;  %263 = vst [vmem:[#allocation2 + $0x8] sm:$0xff] (!%p546_p9), %v815_v0 }
  0x59 PF: > { %v268_v1 = vld [vmem:[%s989_s25 + $0x8] sm:$0xff]  ;;  %v270_v2 = vld [vmem:[%s989_s25 + $0x18] sm:$0xff]  ;;  %v267_v3 = vld [vmem:[%s989_s25] sm:$0xff]  ;;  %v816_v8 = vmov 0.0   ;;  %p547_p13 = scmp.ne.s32.totalorder %s801_s15, 1 }
  0x5a   : > { %v554_v4 = vpack.c.bf16 %v270_v2, %v268_v1  ;;  %v269_v5 = vld [vmem:[%s989_s25 + $0x10] sm:$0xff]  ;;  %v272_v6 = vld [vmem:[%s989_s25 + $0x28] sm:$0xff]  ;;  %v274_v7 = vld [vmem:[%s989_s25 + $0x38] sm:$0xff]  ;;  %363 = vmatprep.mubr.f32.mxu0 %v816_v8  ;;  %v382_v57 = vlaneseq (!%p547_p13) }
  0x5b   : > { %v556_v9 = vpack.c.bf16 %v269_v5, %v267_v3  ;;  %v558_v10 = vpack.c.bf16 %v274_v7, %v272_v6  ;;  %v271_v11 = vld [vmem:[%s989_s25 + $0x20] sm:$0xff]  ;;  %v273_v12 = vld [vmem:[%s989_s25 + $0x30] sm:$0xff]  ;;  %v276_v13 = vld [vmem:[%s989_s25 + $0x48] sm:$0xff] }
  0x5c   : > { %555 = vmatprep.subr.bf16.mxu0 %v554_v4  ;;  %v278_v14 = vld [vmem:[%s989_s25 + $0x58] sm:$0xff]  ;;  %v560_v15 = vpack.c.bf16 %v273_v12, %v271_v11  ;;  %v275_v17 = vld [vmem:[%s989_s25 + $0x40] sm:$0xff]  ;;  %v277_v18 = vld [vmem:[%s989_s25 + $0x50] sm:$0xff]  ;;  %v383_v58 = vshrl.u32 (!%p547_p13), %v382_v57, 7 }
  0x5d   : > { %557 = vmatpush1.bf16.msra.mxu0 %v556_v9  ;;  %v562_v16 = vpack.c.bf16 %v278_v14, %v276_v13  ;;  %v280_v19 = vld [vmem:[%s989_s25 + $0x68] sm:$0xff]  ;;  %v282_v20 = vld [vmem:[%s989_s25 + $0x78] sm:$0xff]  ;;  %v564_v21 = vpack.c.bf16 %v277_v18, %v275_v17  ;;  %v279_v23 = vld [vmem:[%s989_s25 + $0x60] sm:$0xff] }
  0x5e   : > { %559 = vmatprep.subr.bf16.mxu0 %v558_v10  ;;  %v566_v22 = vpack.c.bf16 %v282_v20, %v280_v19  ;;  %v281_v24 = vld [vmem:[%s989_s25 + $0x70] sm:$0xff]  ;;  %v284_v25 = vld [vmem:[%s989_s25 + $0x88] sm:$0xff]  ;;  %v286_v26 = vld [vmem:[%s989_s25 + $0x98] sm:$0xff]  ;;  %v384_v60 = vsub.s32 (!%p547_p13), 0, %v383_v58  ;;  %v388_v61 = vsub.s32 (!%p547_p13), 1, %v383_v58 }
  0x5f   : > { %v568_v27 = vpack.c.bf16 %v281_v24, %v279_v23  ;;  %v570_v28 = vpack.c.bf16 %v286_v26, %v284_v25  ;;  %v283_v29 = vld [vmem:[%s989_s25 + $0x80] sm:$0xff]  ;;  %v285_v30 = vld [vmem:[%s989_s25 + $0x90] sm:$0xff]  ;;  %v288_v31 = vld [vmem:[%s989_s25 + $0xa8] sm:$0xff] }
  0x60   : > { %v290_v32 = vld [vmem:[%s989_s25 + $0xb8] sm:$0xff]  ;;  %v572_v33 = vpack.c.bf16 %v285_v30, %v283_v29  ;;  %v287_v35 = vld [vmem:[%s989_s25 + $0xa0] sm:$0xff]  ;;  %v289_v36 = vld [vmem:[%s989_s25 + $0xb0] sm:$0xff] }
  0x61   : > { %561 = vmatpush1.bf16.msra.mxu0 %v560_v15  ;;  %v574_v34 = vpack.c.bf16 %v290_v32, %v288_v31  ;;  %v292_v37 = vld [vmem:[%s989_s25 + $0xc8] sm:$0xff]  ;;  %v294_v38 = vld [vmem:[%s989_s25 + $0xd8] sm:$0xff]  ;;  %v576_v39 = vpack.c.bf16 %v289_v36, %v287_v35  ;;  %v291_v41 = vld [vmem:[%s989_s25 + $0xc0] sm:$0xff] }
  0x62   : > { %563 = vmatprep.subr.bf16.mxu0 %v562_v16  ;;  %v578_v40 = vpack.c.bf16 %v294_v38, %v292_v37  ;;  %v293_v42 = vld [vmem:[%s989_s25 + $0xd0] sm:$0xff]  ;;  %v296_v43 = vld [vmem:[%s989_s25 + $0xe8] sm:$0xff]  ;;  %v298_v44 = vld [vmem:[%s989_s25 + $0xf8] sm:$0xff] }
  0x63   : > { %v580_v45 = vpack.c.bf16 %v293_v42, %v291_v41  ;;  %v582_v46 = vpack.c.bf16 %v298_v44, %v296_v43  ;;  %v295_v47 = vld [vmem:[%s989_s25 + $0xe0] sm:$0xff]  ;;  %v297_v48 = vld [vmem:[%s989_s25 + $0xf0] sm:$0xff]  ;;  %v265_v52 = vld [vmem:[#allocation2 + $0x8] sm:$0xff] }
  0x64   : > { %v584_v49 = vpack.c.bf16 %v297_v48, %v295_v47  ;;  %v266_v50 = vld [vmem:[%s983_s21] sm:$0xff]  ;;  %v264_v51 = vld [vmem:[#allocation2] sm:$0xff] }
  0x65   : > { %565 = vmatpush1.bf16.msra.mxu0 %v564_v21  ;;  %v380_v59 = vld [vmem:[%s1081_s2] sm:$0x3] (!%p547_p13) }
  0x66   : > { %567 = vmatprep.subr.bf16.mxu0 %v566_v22  ;;  %v385_v0 = vrot.slane (!%p547_p13), %v380_v59, %v384_v60  ;;  %v389_v1 = vrot.slane (!%p547_p13), %v380_v59, %v388_v61 }
  0x69   : > { %569 = vmatpush1.bf16.msra.mxu0 %v568_v27 }
  0x6a   : > { %571 = vmatprep.subr.bf16.mxu0 %v570_v28 }
  0x6d   : > { %573 = vmatpush1.bf16.msra.mxu0 %v572_v33 }
  0x6e   : > { %575 = vmatprep.subr.bf16.mxu0 %v574_v34 }
  0x71   : > { %577 = vmatpush1.bf16.msra.mxu0 %v576_v39 }
  0x72   : > { %579 = vmatprep.subr.bf16.mxu0 %v578_v40 }
  0x75   : > { %581 = vmatpush1.bf16.msra.mxu0 %v580_v45 }
  0x76   : > { %583 = vmatprep.subr.bf16.mxu0 %v582_v46 }
  0x79   : > { %585 = vmatpush1.bf16.msra.mxu0 %v584_v49 }
  0x7c   : > { %364 = vmatmul.mubr.f32.vlgmr.msra.gmra.mrb[0].mxu0 %v266_v50 }
 0x14d   : > { %377 = sbr.rel (%p547_p13) target bundleno = 382 (0x17e), region = 48 }
 0x14f   : > { %v365_v53 = vpop.f32.mrb[0].mxu0 }
 0x150   : > { %v370_v54 = vadd.f32 %v365_v53, %v264_v51  ;;  %v367_v55 = vpop.f32.mrb[1].mxu0 }
 0x151   : > { %v371_v56 = vadd.f32 %v367_v55, %v265_v52 }
 0x152   : > { %372 = vst [vmem:[#allocation2] sm:$0xff] %v370_v54 }
 0x153   : > { %373 = vst [vmem:[#allocation2 + $0x8] sm:$0xff] %v371_v56 }
 0x159   : > { %v378_v62 = vld [vmem:[#allocation2] sm:$0xff] }
 0x15a   : > { %v379_v63 = vld [vmem:[#allocation2 + $0x8] sm:$0xff]  ;;  %v392_v2 = vadd.f32 %v385_v0, %v378_v62 }
 0x15b   : > { %v393_v3 = vadd.f32 %v389_v1, %v379_v63 }
 0x15c   : > { %v394_v4 = vmin.f32 %v392_v2, 20.0  ;;  %vm396_vm1 = vcmp.gt.f32.partialorder %v392_v2, 20.0 }
 0x15d   : > { %v395_v5 = vmin.f32 %v393_v3, 20.0  ;;  %vm397_vm3 = vcmp.gt.f32.partialorder %v393_v3, 20.0 }
 0x15e   : > { %v398_v6 = vmul.f32 1.442695, %v394_v4 }
 0x15f   : > { %v400_v7 = vmul.f32 1.442695, %v395_v5 }
 0x160   : > { %657 = vpow2.f32 %v398_v6 }
 0x161   : > { %659 = vpow2.f32 %v400_v7 }
 0x16a   : > { %v658_v8 = vpop.eup %657 }
 0x16b   : > { %v660_v9 = vpop.eup %659  ;;  %v402_v10 = vadd.f32 1.0, %v658_v8  ;;  %v405_v12 = vmul.f32 -0.5, %v658_v8  ;;  %v408_v15 = vand.u32 2147483647, %v658_v8 }
 0x16c   : > { %v411_v11 = vadd.f32 1.0, %v660_v9  ;;  %v414_v13 = vmul.f32 -0.5, %v660_v9  ;;  %v417_v17 = vand.u32 2147483647, %v660_v9 }
 0x16d   : > { %661 = vlog2.f32 %v402_v10  ;;  %v406_v14 = vadd.f32 1.0, %v405_v12  ;;  %vm409_vm0 = vcmp.lt.f32.partialorder %v408_v15, 0.0004427343 }
 0x16e   : > { %663 = vlog2.f32 %v411_v11  ;;  %v415_v16 = vadd.f32 1.0, %v414_v13  ;;  %vm418_vm2 = vcmp.lt.f32.partialorder %v417_v17, 0.0004427343 }
 0x16f   : > { %v407_v18 = vmul.f32 %v658_v8, %v406_v14 }
 0x170   : > { %v416_v20 = vmul.f32 %v660_v9, %v415_v16 }
 0x177   : > { %v662_v19 = vpop.eup %661 }
 0x178   : > { %v664_v21 = vpop.eup %663  ;;  %v404_v22 = vmul.f32 0.6931472, %v662_v19 }
 0x179   : > { %v413_v23 = vmul.f32 0.6931472, %v664_v21 }
 0x17a   : > { %v410_v24 = vsel %vm409_vm0, %v407_v18, %v404_v22 }
 0x17b   : > { %v420_v25 = vsel %vm396_vm1, %v392_v2, %v410_v24  ;;  %v419_v26 = vsel %vm418_vm2, %v416_v20, %v413_v23 }
 0x17c   : > { %422 = vst [vmem:[#allocation8] sm:$0xff] %v420_v25  ;;  %v421_v27 = vsel %vm397_vm3, %v393_v3, %v419_v26 }
 0x17d   : > { %423 = vst [vmem:[#allocation8 + $0x8] sm:$0xff] %v421_v27 }
 0x17e PF: > { %p1035_p6 = scmp.eq.s32.totalorder %s533_s18, 1  ;;  %s817_s10 = smov [#allocation8]  }
 0x17f   : > { %s434_s12 = sshll.u32 %s817_s10, 4  ;;  %s435_s12 = int_to_ptr.vmem [resolvable:$true] %s434_s12 }
 0x180   : > { %s725_s30 = scalar_lea.vmem %s435_s12, 256  ;;  %p732_p1 = scmp.lt.s32.totalorder %s435_s12, %s435_s12 }
 0x181   : > { %p726_p8 = scmp.ne.s32.totalorder %s435_s12, %s725_s30  ;;  %p733_p5 = scmp.lt.s32.totalorder %s725_s30, %s725_s30 }
 0x183   : > { %p727_p3 = pnand %p726_p8, %p1035_p6  ;;  %p734_p10 = por %p733_p5, %p732_p1 }
 0x185   : > { %p728_p4 = pneg %p727_p3 }
 0x187   : > { %p735_p11 = pnand %p734_p10, %p728_p4 }
 0x189   : > { %738 = shalt.err (!%p735_p11)
}
 0x18a   : > { %s739_s18 = scalar_lea.hbm %s1082_s3, 256 }
 0x18b   : > { %p740_p12 = scmp.ne.s32.totalorder %s1082_s3, %s739_s18  ;;  %p745_p7 = scmp.lt.u32.totalorder %s739_s18, %s1082_s3 }
 0x18d   : > { %p741_p0 = pnand %p740_p12, %p1035_p6 }
 0x18f   : > { %p742_p2 = pneg %p741_p0 }
 0x191   : > { %p747_p9 = pnand %p745_p7, %p742_p2 }
 0x193   : > { %750 = shalt.err (!%p747_p9)
}
 0x194   : > { %591 = dma.vmem_to_hbm [thread:$0]  (%p1035_p6), %s435_s12, 256, %s1082_s3, [#allocation5]  }
 0x195   : > { %784 = dma.done.wait (%p1035_p6), [#allocation5], 256  }
 0x196   : > { %786 = vsyncadd (%p1035_p6), [#allocation5], 4294967040 }
 0x197 PF: > { %s20_s17 = sadd.s32 1, %s809_s17   ;;  %s1092_s12 = smov %s793_s13 }
 0x198   : > { %p17_p13 = scmp.ge.s32.totalorder %s20_s17, 4   ;;  %s1093_s13 = smov %s797_s14 }
 0x199   : > { %s1094_s14 = smov %s889_s24  ;;  %s1095_s15 = smov %s805_s16 }
 0x19a   : > { %s1096_s16 = smov %s1098_s19  ;;  %19 = sbr.rel (!%p17_p13) target bundleno = 7 (0x7), region = 94 }
 0x1a1   :  { %447 = vsyncpa [#allocation4], 1 }
 0x1a2   :  { %449 = vsyncpa [#allocation4 + $0x1], 1 }
 0x1a3   :  { %450 = vsyncpa [#allocation7], 1 }
 0x1a4   :  { %452 = vsyncpa [#allocation7 + $0x1], 1 }
 0x1a5   :  { %453 = vsyncpa [#allocation5], 1 }
 0x1a6   :  { %455 = vsyncpa [#allocation5 + $0x1], 1 }

</bundles_post_ra>
